<compile_context>
chip_gen: v7x
topology: tpu7x:2x2x1
jax: 0.10.0
libtpu: 0.0.40
codegen_flags: <defaults>
</compile_context>

<pallas_src>
import functools

import numpy as np
import jax
import jax.numpy as jnp
from jax.experimental import pallas as pl
from jax.experimental.pallas import tpu as pltpu


# ----------------------------------------------------------------- kernel


def _fused_rules_kernel(ev_rel_ref, act_ref, fin_ref,      # SMEM prefetch
                        w_ref, init_ref, x0_ref, a_ref,    # inputs
                        score_ref,                         # resident output
                        x_ref, lhs_ref,                    # VMEM scratch
                        *, k_rules, b, tn):
    """One grid step = (event e, adjacency column-tile j).

    x_ref   : (K*B, E) f32  running groundings of every multi-hop rule
    lhs_ref : (K*B, E) bf16 per-event snapshot of x_ref (MXU LHS)
    """
    del ev_rel_ref  # only consumed by the adjacency index_map
    e = pl.program_id(0)
    j = pl.program_id(1)
    col = pl.multiple_of(j * tn, tn)

    # Event prologue (first column tile): initialise the resident score /
    # grounding buffers once, then snapshot this event's LHS in bf16.  The
    # snapshot is needed because later tiles of the same event must keep
    # reading the *pre-event* groundings while x_ref is overwritten in place
    # (this replaces the old full-width f32 commit copy-back).
    @pl.when(j == 0)
    def _prologue():
        @pl.when(e == 0)
        def _init():
            score_ref[...] = init_ref[...]
            x_ref[...] = x0_ref[...].astype(jnp.float32)
        lhs_ref[...] = x_ref[...].astype(jnp.bfloat16)

    # One MXU pass over this adjacency tile, shared by all K rules:
    # bf16 x bf16 with f32 accumulation (adjacency tile fed natively).
    # TODO(synk): the bf16 LHS loses exactness for path counts > 256; switch
    # to a mixed f32 x bf16 dot if/when the Mosaic lowering supports it.
    y = jnp.dot(lhs_ref[...], a_ref[0],
                preferred_element_type=jnp.float32)          # (K*B, TN) f32

    # Per-rule epilogue (static unroll over the K multi-hop rules).
    # TODO(synk): for large rule counts replace the scalar-flag unroll with a
    # vectorised (K*B, 1) activity mask / per-group row slabs.
    for k in range(k_rules):
        y_k = y[k * b:(k + 1) * b, :]                        # (B, TN)
        act_k = act_ref[e * k_rules + k]                     # SMEM scalar
        fin_k = fin_ref[e * k_rules + k]

        @pl.when(act_k == 1)                                 # active, not final
        def _update(y_k=y_k, k=k):
            x_ref[k * b:(k + 1) * b, pl.ds(col, tn)] = y_k

        @pl.when(fin_k == 1)                                 # rule's last hop
        def _accumulate(y_k=y_k, k=k):
            score_ref[:, pl.ds(col, tn)] += w_ref[k] * y_k


def _fused_rule_score(weights, init, x0, adjacency, ev_rel, act_flat, fin_flat,
                      *, tile_budget_bytes=4 * 1024 * 1024):
    """score = init + sum_k w_k * (x0_k @ A[r_k2] @ ... @ A[r_kL])."""
    kb, ent = x0.shape
    b = init.shape[0]
    k_rules = kb // b
    num_events = int(ev_rel.shape[0])

    # Adaptive lane-dense column tile: one tile for small E, otherwise blocks
    # of roughly `tile_budget_bytes` (per-grid-step overhead amortisation).
    if ent * ent * 2 <= tile_budget_bytes:
        tn = ent
    else:
        tn = max(128, min(ent, (tile_budget_bytes // (ent * 2)) // 128 * 128))
        while ent % tn != 0:        # ent is a multiple of 128 -> terminates
            tn -= 128
    n_tiles = ent // tn

    grid_spec = pltpu.PrefetchScalarGridSpec(
        num_scalar_prefetch=3,
        grid=(num_events, n_tiles),
        in_specs=[
            # rule weights, (K,) f32, read as SMEM scalars on final hops.
            pl.BlockSpec(memory_space=pltpu.MemorySpace.SMEM),
            # score initialiser (bias + single-hop rules), resident all grid.
            pl.BlockSpec((b, ent), lambda e, j, rel, act, fin: (0, 0)),
            # pre-gathered first-hop rows A[r1][all_h, :] of every rule (bf16).
            pl.BlockSpec((kb, ent), lambda e, j, rel, act, fin: (0, 0)),
            # bf16 adjacency column tile of this event's relation, streamed
            # straight from the full [R, E, E] array (no per-rule copies).
            pl.BlockSpec((1, ent, tn),
                         lambda e, j, rel, act, fin: (rel[e], 0, j)),
        ],
        out_specs=pl.BlockSpec((b, ent), lambda e, j, rel, act, fin: (0, 0)),
        scratch_shapes=[
            pltpu.VMEM((kb, ent), jnp.float32),    # running groundings
            pltpu.VMEM((kb, ent), jnp.bfloat16),   # per-event bf16 LHS snapshot
        ],
    )

    # VMEM budget: double-buffered A stream + resident blocks / scratch.
    # TODO(synk): on v7x (64 MiB physical VMEM) cap this at ~48 MiB and shrink
    # tile_budget_bytes; on v5e/v6e there is headroom for pl.Buffered(3) on
    # the adjacency spec and larger tiles.
    a_stream = 2 * ent * tn * 2
    resident = (2 * b * ent * 4          # init + score
                + kb * ent * 2           # x0
                + kb * ent * 4           # x_ref
                + kb * ent * 2)          # lhs_ref
    vmem_limit = int(min(100 * 2**20,
                         max(32 * 2**20, 2 * (a_stream + resident))))

    kernel = functools.partial(_fused_rules_kernel,
                               k_rules=k_rules, b=b, tn=tn)
    return pl.pallas_call(
        kernel,
        out_shape=jax.ShapeDtypeStruct((b, ent), jnp.float32),
        grid_spec=grid_spec,
        compiler_params=pltpu.CompilerParams(
            # the event chain is sequential (data dependence through x_ref).
            # TODO(synk): on v7x split independent rule groups across the 2
            # TensorCores (core-parallel leading grid axis + partial scores).
            dimension_semantics=("arbitrary", "arbitrary"),
            vmem_limit_bytes=vmem_limit,
        ),
    )(ev_rel, act_flat, fin_flat, weights, init, x0, adjacency)


# ----------------------------------------------------------------- forward


def reasoning_evaluator_forward(params, relation2rules, all_h, query_r,
                                edges_to_remove, num_entities):
    """Mirrors Reasoning_Evaluator.forward with entity_feature == 'bias'.

    `query_r` is a static Python int: the original `all_r[0].item()` is a
    device->host sync whose only purpose is indexing the *Python* list
    `relation2rules`, so the relation is necessarily host-known.
    """
    ent = num_entities
    b = int(all_h.shape[0])
    adjacency = params["adjacency"]                # [R, E, E] bf16 (0/1 exact)
    bias = params["bias"].astype(jnp.float32)      # [E]
    assert ent % 128 == 0, "num_entities must be a multiple of 128"

    # Remove labelled (h, r, t) edges: clear A[r, h, t] (rows = source nodes).
    # TODO(synk): PyTorch removes edges per training example; here they are
    # removed globally, and the functional scatter copies the whole [R, E, E]
    # array -- a production kernel would donate the buffer or mask the few
    # affected rows in-kernel instead.
    if edges_to_remove.shape[0] > 0:
        adjacency = adjacency.at[edges_to_remove[:, 1],
                                 edges_to_remove[:, 0],
                                 edges_to_remove[:, 2]].set(0.0)

    rules = relation2rules[query_r]
    # 'bias' mode: both PyTorch branches return an all-True mask (groundings
    # are >= 0, so mask.sum()==0 implies score==0 and the branches coincide).
    # TODO(synk): the non-'bias' (-inf masking) branch is not implemented.
    mask = jnp.ones((b, ent), dtype=bool)

    if len(rules) == 0:
        return jnp.broadcast_to(bias[None, :], (b, ent)), mask

    # Pad the batch to a sublane multiple (8).
    bp = ((b + 7) // 8) * 8
    all_h_p = jnp.pad(all_h, (0, bp - b)) if bp != b else all_h

    # ---------- static (host-side) schedule over the rule chains ----------
    rule_idx = [int(index) for index, _ in rules]
    bodies = []
    for _, (r_head, r_body) in rules:
        assert r_head == query_r
        bodies.append([int(r) for r in r_body])
    w_all = params["rule_weights"][np.asarray(rule_idx, np.int32)]
    w_all = w_all.astype(jnp.float32)                            # (K_all,)

    # First hop of every rule as a B-row gather (replaces one_hot @ A[r1]).
    first_rel = np.asarray([body[0] for body in bodies], np.int32)
    x0_all = adjacency[first_rel[:, None], all_h_p[None, :], :]  # [K,Bp,E] bf16

    # Score initialiser: bias + single-hop rules (no matmul / kernel events).
    init = jnp.broadcast_to(bias[None, :], (bp, ent)).astype(jnp.float32)
    single = [k for k, body in enumerate(bodies) if len(body) == 1]
    multi = [k for k, body in enumerate(bodies) if len(body) >= 2]
    if single:
        sh = np.asarray(single, np.int32)
        init = init + jnp.einsum("k,kbe->be", w_all[sh],
                                 x0_all[sh].astype(jnp.float32))
    if not multi:                                   # every rule is single-hop
        return init[:b], mask

    mh = np.asarray(multi, np.int32)
    bodies_mh = [bodies[k] for k in multi]
    k_rules = len(bodies_mh)
    w_mh = w_all[mh]                                             # (K,)
    x0_mh = x0_all[mh].reshape(k_rules * bp, ent)                # (K*Bp,E) bf16

    # Levelised event schedule: one event per (hop level, relation); every
    # rule needing that relation at that level shares the adjacency stream.
    ev_rel, act_rows, fin_rows = [], [], []
    for t in range(1, max(len(body) for body in bodies_mh)):
        for rel in sorted({body[t] for body in bodies_mh if len(body) > t}):
            act, fin = [], []
            for body in bodies_mh:
                on = len(body) > t and body[t] == rel
                last = on and t == len(body) - 1
                act.append(1 if (on and not last) else 0)
                fin.append(1 if last else 0)
            ev_rel.append(rel)
            act_rows.append(act)
            fin_rows.append(fin)

    score = _fused_rule_score(
        w_mh, init, x0_mh, adjacency,
        jnp.asarray(ev_rel, jnp.int32),
        jnp.asarray(np.asarray(act_rows, np.int32).reshape(-1)),
        jnp.asarray(np.asarray(fin_rows, np.int32).reshape(-1)))
    return score[:b], mask


# ------------------------------------------------------------------ main

if __name__ == "__main__":
    key = jax.random.PRNGKey(0)
    E = 256   # num_entities (lane-aligned)
    R = 4     # num_relations
    B = 8     # batch of (h, r) queries

    # Rules in the module's format: (head_relation, [body relations...]).
    rules = [(1, [0, 2]), (1, [3]), (1, [2, 0, 1]), (0, [1]), (2, [0, 3])]
    relation2rules = [[] for _ in range(R)]
    for idx, rule in enumerate(rules):
        relation2rules[rule[0]].append([idx, rule])

    k1, k2, k3, k4 = jax.random.split(key, 4)
    # 0/1 adjacency stored in bf16 (exact) to halve the dominant HBM stream.
    adjacency = (jax.random.uniform(k1, (R, E, E)) < 0.05).astype(jnp.bfloat16)
    rule_weights = 0.1 * jax.random.normal(k2, (len(rules),), jnp.float32)
    bias = 0.01 * jax.random.normal(k3, (E,), jnp.float32)
    params = {"adjacency": adjacency, "rule_weights": rule_weights, "bias": bias}

    all_h = jax.random.randint(k4, (B,), 0, E, dtype=jnp.int32)
    query_r = 1                                        # static query relation
    edges_to_remove = jnp.array([[3, 1, 7], [10, 1, 20]], jnp.int32)  # (h,r,t)

    score, mask = reasoning_evaluator_forward(
        params, relation2rules, all_h, query_r, edges_to_remove, E)
    jax.block_until_ready((score, mask))
    assert score.shape == (B, E) and mask.shape == (B, E)

    # ---- pure-JAX reference (module semantics) -----------------------------
    adj_ref = adjacency.at[edges_to_remove[:, 1],
                           edges_to_remove[:, 0],
                           edges_to_remove[:, 2]].set(0.0).astype(jnp.float32)
    h_onehot = jax.nn.one_hot(all_h, E, dtype=jnp.float32)
    ref = jnp.zeros((B, E), jnp.float32)
    for index, (r_head, r_body) in relation2rules[query_r]:
        x = h_onehot
        for rel in r_body:
            x = x @ adj_ref[rel]
        ref = ref + x * rule_weights[index]
    ref = ref + bias[None, :]

    np.testing.assert_allclose(np.asarray(score), np.asarray(ref),
                               rtol=1e-3, atol=1e-3)
    assert bool(jnp.all(mask))
    print("KERNEL_OK")
</pallas_src>

<mosaic_0001>
module attributes {stable_mosaic.version = 11 : i64} {
  func.func @_fused_rules_kernel(%arg0: i32, %arg1: i32, %arg2: memref<3xi32, #tpu.memory_space<smem>>, %arg3: memref<6xi32, #tpu.memory_space<smem>>, %arg4: memref<6xi32, #tpu.memory_space<smem>>, %arg5: memref<2xf32, #tpu.memory_space<smem>>, %arg6: memref<8x256xf32, #tpu.memory_space<vmem>>, %arg7: memref<16x256xbf16, #tpu.memory_space<vmem>>, %arg8: memref<1x256x256xbf16, #tpu.memory_space<vmem>>, %arg9: memref<8x256xf32, #tpu.memory_space<vmem>>, %arg10: memref<16x256xf32, #tpu.memory_space<vmem>>, %arg11: memref<16x256xbf16, #tpu.memory_space<vmem>>) attributes {dimension_semantics = [#tpu.dimension_semantics<arbitrary>, #tpu.dimension_semantics<arbitrary>], iteration_bounds = array<i64: 3, 1>, scalar_prefetch = 3 : i64, scratch_operands = 2 : i64, tpu.core_type = #tpu.core_type<tc>, window_params = [{transform_indices = @transform_0, window_bounds = array<i64: 2>}, {pipeline_mode = #tpu.pipeline_mode<synchronous>, transform_indices = @transform_1, window_bounds = array<i64: 8, 256>}, {pipeline_mode = #tpu.pipeline_mode<synchronous>, transform_indices = @transform_2, window_bounds = array<i64: 16, 256>}, {transform_indices = @transform_3, window_bounds = array<i64: 1, 256, 256>}, {pipeline_mode = #tpu.pipeline_mode<synchronous>, transform_indices = @transform_4, window_bounds = array<i64: 8, 256>}]} {
    %c256_i32 = arith.constant 256 : i32
    %0 = arith.muli %arg1, %c256_i32 : i32
    %1 = tpu.assume_multiple %0, 256 : i32
    %c0_i32 = arith.constant 0 : i32
    %2 = arith.cmpi eq, %arg1, %c0_i32 : i32
    %3 = arith.extui %2 : i1 to i32
    %c0_i32_0 = arith.constant 0 : i32
    %4 = arith.cmpi ne, %3, %c0_i32_0 : i32
    scf.if %4 {
      %c0_i32_19 = arith.constant 0 : i32
      %39 = arith.cmpi eq, %arg0, %c0_i32_19 : i32
      %40 = arith.extui %39 : i1 to i32
      %c0_i32_20 = arith.constant 0 : i32
      %41 = arith.cmpi ne, %40, %c0_i32_20 : i32
      scf.if %41 {
        %c0_25 = arith.constant 0 : index
        %c0_26 = arith.constant 0 : index
        %45 = vector.load %arg6[%c0_25, %c0_26] : memref<8x256xf32, #tpu.memory_space<vmem>>, vector<8x256xf32>
        %c0_27 = arith.constant 0 : index
        %c0_28 = arith.constant 0 : index
        %46 = vector.load %arg9[%c0_27, %c0_28] : memref<8x256xf32, #tpu.memory_space<vmem>>, vector<8x256xf32>
        tpu.vector_store %arg9[%c0_27, %c0_28], %45 {strides = array<i32>} : memref<8x256xf32, #tpu.memory_space<vmem>>, vector<8x256xf32>,
        %c0_29 = arith.constant 0 : index
        %c0_30 = arith.constant 0 : index
        %47 = vector.load %arg7[%c0_29, %c0_30] : memref<16x256xbf16, #tpu.memory_space<vmem>>, vector<16x256xbf16>
        %48 = arith.extf %47 : vector<16x256xbf16> to vector<16x256xf32>
        %c0_31 = arith.constant 0 : index
        %c0_32 = arith.constant 0 : index
        %49 = vector.load %arg10[%c0_31, %c0_32] : memref<16x256xf32, #tpu.memory_space<vmem>>, vector<16x256xf32>
        tpu.vector_store %arg10[%c0_31, %c0_32], %48 {strides = array<i32>} : memref<16x256xf32, #tpu.memory_space<vmem>>, vector<16x256xf32>,
      } else {
      }
      %c0_21 = arith.constant 0 : index
      %c0_22 = arith.constant 0 : index
      %42 = vector.load %arg10[%c0_21, %c0_22] : memref<16x256xf32, #tpu.memory_space<vmem>>, vector<16x256xf32>
      %43 = arith.truncf %42 : vector<16x256xf32> to vector<16x256xbf16>
      %c0_23 = arith.constant 0 : index
      %c0_24 = arith.constant 0 : index
      %44 = vector.load %arg11[%c0_23, %c0_24] : memref<16x256xbf16, #tpu.memory_space<vmem>>, vector<16x256xbf16>
      tpu.vector_store %arg11[%c0_23, %c0_24], %43 {strides = array<i32>} : memref<16x256xbf16, #tpu.memory_space<vmem>>, vector<16x256xbf16>,
    } else {
    }
    %c0 = arith.constant 0 : index
    %c0_1 = arith.constant 0 : index
    %5 = vector.load %arg11[%c0, %c0_1] : memref<16x256xbf16, #tpu.memory_space<vmem>>, vector<16x256xbf16>
    %c0_2 = arith.constant 0 : index
    %c0_3 = arith.constant 0 : index
    %c0_4 = arith.constant 0 : index
    %6 = vector.load %arg8[%c0_2, %c0_3, %c0_4] : memref<1x256x256xbf16, #tpu.memory_space<vmem>>, vector<1x256x256xbf16>
    %7 = vector.shape_cast %6 : vector<1x256x256xbf16> to vector<256x256xbf16>
    %cst = arith.constant dense<0.000000e+00> : vector<16x256xf32>
    %8 = tpu.matmul %5, %7, %cst {dimension_numbers = #tpu.dot_dimension_numbers<[1], [0], [0], [1], [0, 0, 1, 1], [], []>} : vector<16x256xbf16>, vector<256x256xbf16>, vector<16x256xf32> -> vector<16x256xf32>
    %9 = vector.extract_strided_slice %8 {offsets = [0, 0], sizes = [8, 256], strides = [1, 1]} : vector<16x256xf32> to vector<8x256xf32>
    %c2_i32 = arith.constant 2 : i32
    %10 = arith.muli %arg0, %c2_i32 : i32
    %c0_i32_5 = arith.constant 0 : i32
    %11 = arith.addi %10, %c0_i32_5 : i32
    %12 = arith.index_cast %11 : i32 to index
    %13 = memref.load %arg3[%12] : memref<6xi32, #tpu.memory_space<smem>>
    %c2_i32_6 = arith.constant 2 : i32
    %14 = arith.muli %arg0, %c2_i32_6 : i32
    %c0_i32_7 = arith.constant 0 : i32
    %15 = arith.addi %14, %c0_i32_7 : i32
    %16 = arith.index_cast %15 : i32 to index
    %17 = memref.load %arg4[%16] : memref<6xi32, #tpu.memory_space<smem>>
    %c1_i32 = arith.constant 1 : i32
    %18 = arith.cmpi eq, %13, %c1_i32 : i32
    %19 = arith.extui %18 : i1 to i32
    %c0_i32_8 = arith.constant 0 : i32
    %20 = arith.cmpi ne, %19, %c0_i32_8 : i32
    scf.if %20 {
      %c0_19 = arith.constant 0 : index
      %39 = arith.index_cast %1 : i32 to index
      %40 = vector.load %arg10[%c0_19, %39] : memref<16x256xf32, #tpu.memory_space<vmem>>, vector<8x256xf32>
      tpu.vector_store %arg10[%c0_19, %39], %9 {strides = array<i32>} : memref<16x256xf32, #tpu.memory_space<vmem>>, vector<8x256xf32>,
    } else {
    }
    %c1_i32_9 = arith.constant 1 : i32
    %21 = arith.cmpi eq, %17, %c1_i32_9 : i32
    %22 = arith.extui %21 : i1 to i32
    %c0_i32_10 = arith.constant 0 : i32
    %23 = arith.cmpi ne, %22, %c0_i32_10 : i32
    scf.if %23 {
      %c0_19 = arith.constant 0 : index
      %39 = arith.index_cast %1 : i32 to index
      %40 = vector.load %arg9[%c0_19, %39] : memref<8x256xf32, #tpu.memory_space<vmem>>, vector<8x256xf32>
      %c0_20 = arith.constant 0 : index
      %41 = memref.load %arg5[%c0_20] : memref<2xf32, #tpu.memory_space<smem>>
      %42 = vector.broadcast %41 : f32 to vector<8x256xf32>
      %43 = arith.mulf %42, %9 : vector<8x256xf32>
      %44 = arith.addf %40, %43 : vector<8x256xf32>
      %c0_21 = arith.constant 0 : index
      %45 = arith.index_cast %1 : i32 to index
      %46 = vector.load %arg9[%c0_21, %45] : memref<8x256xf32, #tpu.memory_space<vmem>>, vector<8x256xf32>
      tpu.vector_store %arg9[%c0_21, %45], %44 {strides = array<i32>} : memref<8x256xf32, #tpu.memory_space<vmem>>, vector<8x256xf32>,
    } else {
    }
    %24 = vector.extract_strided_slice %8 {offsets = [8, 0], sizes = [8, 256], strides = [1, 1]} : vector<16x256xf32> to vector<8x256xf32>
    %c2_i32_11 = arith.constant 2 : i32
    %25 = arith.muli %arg0, %c2_i32_11 : i32
    %c1_i32_12 = arith.constant 1 : i32
    %26 = arith.addi %25, %c1_i32_12 : i32
    %27 = arith.index_cast %26 : i32 to index
    %28 = memref.load %arg3[%27] : memref<6xi32, #tpu.memory_space<smem>>
    %c2_i32_13 = arith.constant 2 : i32
    %29 = arith.muli %arg0, %c2_i32_13 : i32
    %c1_i32_14 = arith.constant 1 : i32
    %30 = arith.addi %29, %c1_i32_14 : i32
    %31 = arith.index_cast %30 : i32 to index
    %32 = memref.load %arg4[%31] : memref<6xi32, #tpu.memory_space<smem>>
    %c1_i32_15 = arith.constant 1 : i32
    %33 = arith.cmpi eq, %28, %c1_i32_15 : i32
    %34 = arith.extui %33 : i1 to i32
    %c0_i32_16 = arith.constant 0 : i32
    %35 = arith.cmpi ne, %34, %c0_i32_16 : i32
    scf.if %35 {
      %c8 = arith.constant 8 : index
      %39 = arith.index_cast %1 : i32 to index
      %40 = vector.load %arg10[%c8, %39] : memref<16x256xf32, #tpu.memory_space<vmem>>, vector<8x256xf32>
      tpu.vector_store %arg10[%c8, %39], %24 {strides = array<i32>} : memref<16x256xf32, #tpu.memory_space<vmem>>, vector<8x256xf32>,
    } else {
    }
    %c1_i32_17 = arith.constant 1 : i32
    %36 = arith.cmpi eq, %32, %c1_i32_17 : i32
    %37 = arith.extui %36 : i1 to i32
    %c0_i32_18 = arith.constant 0 : i32
    %38 = arith.cmpi ne, %37, %c0_i32_18 : i32
    scf.if %38 {
      %c0_19 = arith.constant 0 : index
      %39 = arith.index_cast %1 : i32 to index
      %40 = vector.load %arg9[%c0_19, %39] : memref<8x256xf32, #tpu.memory_space<vmem>>, vector<8x256xf32>
      %c1 = arith.constant 1 : index
      %41 = memref.load %arg5[%c1] : memref<2xf32, #tpu.memory_space<smem>>
      %42 = vector.broadcast %41 : f32 to vector<8x256xf32>
      %43 = arith.mulf %42, %24 : vector<8x256xf32>
      %44 = arith.addf %40, %43 : vector<8x256xf32>
      %c0_20 = arith.constant 0 : index
      %45 = arith.index_cast %1 : i32 to index
      %46 = vector.load %arg9[%c0_20, %45] : memref<8x256xf32, #tpu.memory_space<vmem>>, vector<8x256xf32>
      tpu.vector_store %arg9[%c0_20, %45], %44 {strides = array<i32>} : memref<8x256xf32, #tpu.memory_space<vmem>>, vector<8x256xf32>,
    } else {
    }
    return
  }
  func.func @transform_0(%arg0: i32, %arg1: i32, %arg2: memref<3xi32, #tpu.memory_space<smem>>, %arg3: memref<6xi32, #tpu.memory_space<smem>>, %arg4: memref<6xi32, #tpu.memory_space<smem>>) -> i32 {
    %c0_i32 = arith.constant 0 : i32
    %c0_i32_0 = arith.constant 0 : i32
    return %c0_i32 : i32
  }
  func.func @transform_1(%arg0: i32, %arg1: i32, %arg2: memref<3xi32, #tpu.memory_space<smem>>, %arg3: memref<6xi32, #tpu.memory_space<smem>>, %arg4: memref<6xi32, #tpu.memory_space<smem>>) -> (i32, i32) {
    %c0_i32 = arith.constant 0 : i32
    %c0_i32_0 = arith.constant 0 : i32
    %c0_i32_1 = arith.constant 0 : i32
    return %c0_i32, %c0_i32_0 : i32, i32
  }
  func.func @transform_2(%arg0: i32, %arg1: i32, %arg2: memref<3xi32, #tpu.memory_space<smem>>, %arg3: memref<6xi32, #tpu.memory_space<smem>>, %arg4: memref<6xi32, #tpu.memory_space<smem>>) -> (i32, i32) {
    %c0_i32 = arith.constant 0 : i32
    %c0_i32_0 = arith.constant 0 : i32
    %c0_i32_1 = arith.constant 0 : i32
    return %c0_i32, %c0_i32_0 : i32, i32
  }
  func.func @transform_3(%arg0: i32, %arg1: i32, %arg2: memref<3xi32, #tpu.memory_space<smem>>, %arg3: memref<6xi32, #tpu.memory_space<smem>>, %arg4: memref<6xi32, #tpu.memory_space<smem>>) -> (i32, i32, i32) {
    %0 = arith.index_cast %arg0 : i32 to index
    %1 = memref.load %arg2[%0] : memref<3xi32, #tpu.memory_space<smem>>
    %c0_i32 = arith.constant 0 : i32
    %c0_i32_0 = arith.constant 0 : i32
    return %1, %c0_i32, %arg1 : i32, i32, i32
  }
  func.func @transform_4(%arg0: i32, %arg1: i32, %arg2: memref<3xi32, #tpu.memory_space<smem>>, %arg3: memref<6xi32, #tpu.memory_space<smem>>, %arg4: memref<6xi32, #tpu.memory_space<smem>>) -> (i32, i32) {
    %c0_i32 = arith.constant 0 : i32
    %c0_i32_0 = arith.constant 0 : i32
    %c0_i32_1 = arith.constant 0 : i32
    return %c0_i32, %c0_i32_0 : i32, i32
  }
}

</mosaic_0001>

<bundles_post_ra>
// kernel: tpu_custom_call.1
= control target key start
LH: loop header
LB: loop body
LE: loop exit
PB: predicated region body
PF: predicated region fallthrough
CT: control target
= control target key end

     0   :  { %s1444_s0 = inlined_call_operand.hbm [shape: s32[3], index: 0, kind: input, shape index: {}]   ;;  %s1445_s3 = inlined_call_operand.hbm [shape: f32[2], index: 3, kind: input, shape index: {}]   ;;  %s1446_s4 = inlined_call_operand.hbm [shape: f32[8,256], index: 4, kind: input, shape index: {}]   ;;  %s1447_s5 = inlined_call_operand.vmem [shape: bf16[16,256], index: 5, kind: input, shape index: {}]   ;;  %s1448_s6 = inlined_call_operand.hbm [shape: bf16[4,256,256], index: 6, kind: input, shape index: {}]   ;;  %s1449_s7 = inlined_call_operand.hbm [shape: f32[8,256], index: 7, kind: output, shape index: {}]   ;;  %s1450_s1 = inlined_call_operand.vmem [shape: s32[6], index: 1, kind: input, shape index: {}]   ;;  %s1451_s2 = inlined_call_operand.vmem [shape: s32[6], index: 2, kind: input, shape index: {}]  }
   0x1   :  { %s892_s26 = scalar_lea.hbm %s1444_s0, 16 }
   0x2   :  { %p893_p0 = scmp.ne.s32.totalorder %s1444_s0, %s892_s26  ;;  %p896_p1 = scmp.lt.u32.totalorder %s892_s26, %s1444_s0 }
   0x4   :  { %p898_p2 = pnand %p896_p1, %p893_p0 }
   0x6   :  { %901 = shalt.err (!%p898_p2)  }
   0x7   :  { %s1089_s8 = smov [#allocation5]   ;;  %s14_s13 = sshll.u32 %s1450_s1, 4  ;;  %s15_s13 = int_to_ptr.vmem [resolvable:$true] %s14_s13 }
   0x8   :  { %13 = dma.hbm_to_smem %s1444_s0, 16, %s1089_s8, [#allocation4] }
   0x9   :  { %s18_s16 = sshll.u32 %s1451_s2, 4  ;;  %s902_s17 = scalar_lea.vmem %s15_s13, 16  ;;  %s19_s16 = int_to_ptr.vmem [resolvable:$true] %s18_s16 }
   0xa   :  { %p903_p3 = scmp.ne.s32.totalorder %s15_s13, %s902_s17  ;;  %p907_p4 = scmp.lt.s32.totalorder %s15_s13, %s15_s13 }
   0xb   :  { %p908_p5 = scmp.lt.s32.totalorder %s902_s17, %s902_s17 }
   0xd   :  { %p909_p6 = por %p908_p5, %p907_p4 }
   0xf   :  { %p910_p7 = pnand %p909_p6, %p903_p3 }
  0x11   :  { %913 = shalt.err (!%p910_p7)  }
  0x12   :  { %s1090_s18 = smov [#allocation6]   ;;  %s914_s0 = scalar_lea.vmem %s19_s16, 16 }
  0x13   :  { %17 = dma.vmem_to_smem %s15_s13, 16, %s1090_s18, [#allocation4] }
  0x14   :  { %p915_p8 = scmp.ne.s32.totalorder %s19_s16, %s914_s0  ;;  %p919_p9 = scmp.lt.s32.totalorder %s19_s16, %s19_s16 }
  0x15   :  { %p920_p10 = scmp.lt.s32.totalorder %s914_s0, %s914_s0 }
  0x17   :  { %p921_p11 = por %p920_p10, %p919_p9 }
  0x19   :  { %p922_p12 = pnand %p921_p11, %p915_p8 }
  0x1b   :  { %925 = shalt.err (!%p922_p12)  }
  0x1c   :  { %s1091_s1 = smov [#allocation7]  }
  0x1d   :  { %21 = dma.vmem_to_smem %s19_s16, 16, %s1091_s1, [#allocation4] }
  0x1e   :  { %1047 = dma.done.wait [#allocation4], 48 }
  0x1f   :  { %1048 = vsyncadd [#allocation4], 4294967248 }
  0x20   :  { %23 = sfence }
  0x21   :  { %24 = vsyncpa [#allocation11], 0 }
  0x22   :  { %25 = vsyncpa [#allocation9], 0 }
  0x23   :  { %26 = vsyncpa [#allocation14], 0 }
  0x24   :  { %28 = vsyncpa [#allocation14 + $0x1], 0 }
  0x25   :  { %29 = vsyncpa [#allocation10], 0  ;;  %s1156_s2 = smov 0   ;;  %s1158_s19 = smov 0  }
  0x26   :  { %s1160_s20 = smov 0   ;;  %s1162_s21 = smov 0  }
  0x27   :  { %s1164_s22 = smov 0   ;;  %s1166_s23 = smov 0  }
  0x28 LB: > { %s1456_s24 = sadd.s32 4294967295, %s1087_s23   ;;  %p128_p13 = scmp.ne.s32.totalorder %s1075_s20, %s1071_s19  ;;  %s1087_s23 = sphi %s1166_s23, %s35_s23   ;;  %s1083_s22 = sphi %s1164_s22, %s1476_s22   ;;  %s1079_s21 = sphi %s1162_s21, %s1475_s21   ;;  %s1075_s20 = sphi %s1160_s20, %s1474_s20   ;;  %s1071_s19 = sphi %s1158_s19, %s1473_s19   ;;  %s1067_s2 = sphi %s1156_s2, %s1472_s2  }
  0x29   : > { %p129_p0 = scmp.eq.s32.totalorder %s1087_s23, 0  ;;  %p134_p1 = scmp.ne.s32.totalorder %s1071_s19, %s1067_s2 }
  0x2a   : > { %p1191_p2 = scmp.eq.s32.totalorder %s1456_s24, 0  ;;  %p697_p4 = scmp.ge.s32.totalorder %s1087_s23, 1 }
  0x2b   : > { %p1195_p3 = por %p129_p0, %p128_p13  ;;  %p166_p6 = scmp.lt.s32.totalorder %s1087_s23, 4 }
  0x2c   : > { %s1457_s25 = scalar_select %p1191_p2, 1, 0 }
  0x2d   : > { %p1202_p5 = por %p1191_p2, %p134_p1  ;;  %p1207_p7 = pnand %p697_p4, %p166_p6 }
  0x2e   : > { %s1092_s29 = smov [#allocation12]   ;;  %s47_s9 = sadd.s32 1, %s1083_s22 }
  0x2f   : > { %s1459_s27 = scalar_select %p1202_p5, 1, 0 }
  0x30   : > { %s1460_s28 = scalar_select %p1207_p7, 1, 0 }
  0x31   : > { %p768_p8 = pneg %p1207_p7  ;;  %s188_s30 = sshll.u32 %s1092_s29, 4  ;;  %s1213_s30 = int_to_ptr.vmem [resolvable:$true] %s188_s30 }
  0x32   : > { %p1224_p10 = scmp.ge.s32.totalorder %s47_s9, 3  ;;  %s1229_s11 = sld [smem:[#allocation5 + %s1083_s22]] }
  0x33   : > { %p1217_p9 = pnand %p768_p8, %p1191_p2  ;;  %s926_s14 = scalar_lea.hbm %s1445_s3, 16 }
  0x34   : > { %p927_p12 = scmp.ne.s32.totalorder %s1445_s3, %s926_s14  ;;  %p933_p4 = scmp.lt.u32.totalorder %s926_s14, %s1445_s3 }
  0x35   : > { %p928_p13 = pneg %p1217_p9 }
  0x37   : > { %p929_p0 = pnand %p928_p13, %p927_p12 }
  0x39   : > { %p930_p1 = pneg %p929_p0 }
  0x3b   : > { %p935_p6 = pnand %p933_p4, %p930_p1 }
  0x3d   : > { %938 = shalt.err (!%p935_p6)
}
  0x3e   : > { %s1093_s0 = smov [#allocation8]   ;;  %s939_s13 = scalar_lea.hbm %s1446_s4, 256 }
  0x3f   : > { %771 = dma.hbm_to_smem (!%p1217_p9), %s1445_s3, 16, %s1093_s0, [#allocation11]  }
  0x40   : > { %p940_p8 = scmp.ne.s32.totalorder %s1446_s4, %s939_s13  ;;  %p946_p1 = scmp.lt.u32.totalorder %s939_s13, %s1446_s4 }
  0x42   : > { %p942_p12 = pnand %p940_p8, %p928_p13 }
  0x44   : > { %p943_p0 = pneg %p942_p12 }
  0x46   : > { %p948_p4 = pnand %p946_p1, %p943_p0 }
  0x48   : > { %951 = shalt.err (!%p948_p4)
}
  0x49   : > { %s952_s18 = scalar_lea.vmem %s1213_s30, 256  ;;  %p960_p2 = scmp.lt.s32.totalorder %s1213_s30, %s1213_s30 }
  0x4a   : > { %p953_p6 = scmp.ne.s32.totalorder %s1213_s30, %s952_s18  ;;  %p961_p8 = scmp.lt.s32.totalorder %s952_s18, %s952_s18 }
  0x4c   : > { %p955_p11 = pnand %p953_p6, %p928_p13  ;;  %p962_p12 = por %p961_p8, %p960_p2 }
  0x4e   : > { %p956_p5 = pneg %p955_p11 }
  0x50   : > { %p963_p7 = pnand %p962_p12, %p956_p5 }
  0x52   : > { %966 = shalt.err (!%p963_p7)
}
  0x53   : > { %774 = dma.hbm_to_vmem [thread:$0]  (!%p1217_p9), %s1446_s4, 256, %s1213_s30, [#allocation9]  }
  0x54   : > { %s1478_s9 = smov (%p1224_p10, %s47_s9), 0  ;;  %s202_s8 = sand.u32 1, %s1075_s20  }
  0x55   : > { %p1463_p2 = scmp.lt.s32.totalorder %s1087_s23, 3  ;;  %s115_s29 = sld [smem:[#allocation5 + %s1478_s9]] }
  0x56   : > { %s701_s12 = sshll.u32 %s202_s8, 8  ;;  %s121_s30 = sadd.s32 1, %s1075_s20 }
  0x57   : > { %p1287_p5 = pnand %p1463_p2, %p1195_p3  ;;  %p1465_p7 = pmov %p1463_p2 }
  0x58   : > { %s756_s13 = scalar_select %p1195_p3, [#allocation5], [#allocation16] }
  0x59   : > { %s757_s15 = scalar_select %p1195_p3, %s1083_s22, 0 }
  0x5a   : > { %s1480_s13 = smov (!%p1465_p7, %s756_s13), [#allocation17]  ;;  %p1466_p10 = pmov %p1463_p2 }
  0x5b   : > { %s116_s10 = ssub.s32 %s1229_s11, %s115_s29  ;;  %s206_s17 = scalar_lea.vmem [#allocation13], %s701_s12 }
  0x5c   : > { %p119_p9 = scmp.eq.s32.totalorder %s116_s10, 0  ;;  %s1482_s15 = smov (!%p1466_p10, %s757_s15), 0 }
  0x5d   : > { %s207_s14 = sld [smem:[%s1480_s13 + %s1482_s15]]  ;;  %s216_s18 = sshll.u32 %s206_s17, 4  ;;  %s1306_s18 = int_to_ptr.vmem [resolvable:$true] %s216_s18 }
  0x5e   : > { %s1304_s16 = scalar_select %p119_p9, %s1075_s20, %s121_s30  }
  0x5f   : > { %s1313_s11 = scalar_lea.sflag [#allocation14], %s202_s8  ;;  %p969_p11 = pneg %p1287_p5 }
  0x60   : > { %s972_s15 = scalar_lea.hbm %s1448_s6, 16384 }
  0x63   : > { %s751_s0 = sshll.u32 %s207_s14, 12 }
  0x64   : > { %s1311_s24 = scalar_lea.hbm %s1448_s6, %s751_s0 }
  0x65   : > { %s967_s29 = scalar_lea.hbm %s1311_s24, 4096  ;;  %p973_p1 = scmp.lt.u32.totalorder %s1311_s24, %s1448_s6 }
  0x66   : > { %p968_p3 = scmp.ne.s32.totalorder %s1311_s24, %s967_s29  ;;  %p974_p4 = scmp.lt.u32.totalorder %s972_s15, %s967_s29 }
  0x67   : > { %p976_p8 = scmp.lt.u32.totalorder %s967_s29, %s1311_s24 }
  0x68   : > { %p970_p13 = pnand %p969_p11, %p968_p3  ;;  %p975_p6 = por %p974_p4, %p973_p1 }
  0x6a   : > { %p971_p0 = pneg %p970_p13  ;;  %p977_p12 = por %p976_p8, %p975_p6 }
  0x6c   : > { %p978_p2 = pnand %p977_p12, %p971_p0 }
  0x6e   : > { %981 = shalt.err (!%p978_p2)
}
  0x6f   : > { %s982_s8 = scalar_lea.vmem %s1306_s18, 4096  ;;  %s1094_s14 = smov [#allocation13]  }
  0x70   : > { %p983_p7 = scmp.ne.s32.totalorder %s1306_s18, %s982_s8  ;;  %s987_s17 = sshll.u32 %s1094_s14, 4  ;;  %s988_s17 = int_to_ptr.vmem [resolvable:$false] %s987_s17 }
  0x71   : > { %s989_s0 = scalar_lea.vmem %s988_s17, 8192  ;;  %p990_p3 = scmp.lt.s32.totalorder %s1306_s18, %s988_s17 }
  0x72   : > { %p985_p9 = pnand %p983_p7, %p969_p11  ;;  %p991_p13 = scmp.lt.s32.totalorder %s989_s0, %s982_s8 }
  0x74   : > { %p986_p10 = pneg %p985_p9  ;;  %p992_p1 = por %p991_p13, %p990_p3 }
  0x76   : > { %p993_p4 = pnand %p992_p1, %p986_p10 }
  0x78   : > { %996 = shalt.err (!%p993_p4)
}
  0x79   : > { %s1095_s1 = smov 128   ;;  %s1096_s26 = smov 8  }
  0x7a   : > { %780 = dma.hbm_to_vmem [thread:$0]  (!%p1287_p5), %s1311_s24, 4096, %s1306_s18, %s1313_s11, %s1095_s1, %s1095_s1, %s1096_s26  }
  0x7b   : > { %p1467_p11 = scmp.ne.s32.totalorder %s1460_s28, 0 }
  0x7c   : > { %p1468_p0 = scmp.ne.s32.totalorder (!%p1467_p11), %s1457_s25, 0 }
  0x7d   : > { %228 = sbr.rel (%p1467_p11) target bundleno = 497 (0x1f1), region = 36 }
  0x84   : > { %1050 = dma.done.wait (%p1468_p0), [#allocation11], 16  }
  0x85   : > { %1052 = vsyncadd (%p1468_p0), [#allocation11], 4294967280 }
  0x86   : > { %1054 = dma.done.wait (%p1468_p0), [#allocation9], 256  }
  0x87   : > { %1056 = vsyncadd (%p1468_p0), [#allocation9], 4294967040  ;;  %s238_s29 = sand.u32 1, %s1071_s19   ;;  %p1469_p5 = scmp.ne.s32.totalorder %s1459_s27, 0 }
  0x88   : > { %s707_s2 = sshll.u32 %s238_s29, 8  ;;  %s239_s24 = scalar_lea.sflag [#allocation14], %s238_s29 }
  0x89   : > { %s1352_s18 = scalar_lea.vmem [#allocation13], %s707_s2 }
  0x8a   : > { %1058 = dma.done.wait (%p1469_p5), %s239_s24, 4096  }
  0x8b   : > { %1060 = vsyncadd (%p1469_p5), %s239_s24, 4294963200 }
  0x8c   : > { %247 = sfence }
  0x8d   : > { %p708_p6 = scmp.ne.s32.totalorder %s1079_s21, 0 }
  0x8e   : > { %v274_v0 = vld [vmem:[#allocation12] sm:$0xff] (!%p708_p6)  ;;  %v275_v1 = vld [vmem:[#allocation12 + $0x8] sm:$0xff] (!%p708_p6)  ;;  %v278_v2 = vld [vmem:[%s1447_s5] sm:$0xff] (!%p708_p6) }
  0x8f   : > { %273 = sbr.rel (%p708_p6) target bundleno = 150 (0x96), region = 56  ;;  %276 = vst [vmem:[#allocation15] sm:$0xff] (!%p708_p6), %v274_v0  ;;  %277 = vst [vmem:[#allocation15 + $0x8] sm:$0xff] (!%p708_p6), %v275_v1  ;;  %v280_v3 = vunpack.c.l.bf16 (!%p708_p6), %v278_v2  ;;  %v281_v4 = vunpack.c.h.bf16 (!%p708_p6), %v278_v2  ;;  %v279_v5 = vld [vmem:[%s1447_s5 + $0x8] sm:$0xff] (!%p708_p6) }
  0x90   : > { %v282_v6 = vunpack.c.l.bf16 (!%p708_p6), %v279_v5  ;;  %v283_v7 = vunpack.c.h.bf16 (!%p708_p6), %v279_v5 }
  0x91   : > { %284 = vst [vmem:[#allocation2] sm:$0xff] (!%p708_p6), %v280_v3  ;;  %285 = vst [vmem:[#allocation2 + $0x8] sm:$0xff] (!%p708_p6), %v281_v4 }
  0x92   : > { %286 = vst [vmem:[#allocation2 + $0x10] sm:$0xff] (!%p708_p6), %v282_v6  ;;  %287 = vst [vmem:[#allocation2 + $0x18] sm:$0xff] (!%p708_p6), %v283_v7 }
  0x96 PF: > { %v844_v8 = vld [vmem:[%s1352_s18 + $0x4] ss:$8 sps:$4 sm:$0xff]   ;;  %v846_v9 = vld [vmem:[%s1352_s18] ss:$8 sps:$4 sm:$0xff]   ;;  %v847_v10 = vld [vmem:[%s1352_s18 + $0x14] ss:$8 sps:$4 sm:$0xff]  }
  0x97   : > { %490 = vmatprep.subr.bf16.mxu0 %v844_v8  ;;  %v849_v11 = vld [vmem:[%s1352_s18 + $0x10] ss:$8 sps:$4 sm:$0xff]   ;;  %v850_v12 = vld [vmem:[%s1352_s18 + $0x24] ss:$8 sps:$4 sm:$0xff]   ;;  %v852_v13 = vld [vmem:[%s1352_s18 + $0x20] ss:$8 sps:$4 sm:$0xff]  }
  0x98   : > { %491 = vmatpush1.bf16.msra.mxu0 %v846_v9  ;;  %v853_v14 = vld [vmem:[%s1352_s18 + $0x34] ss:$8 sps:$4 sm:$0xff]   ;;  %v855_v15 = vld [vmem:[%s1352_s18 + $0x30] ss:$8 sps:$4 sm:$0xff]   ;;  %v856_v16 = vld [vmem:[%s1352_s18 + $0x44] ss:$8 sps:$4 sm:$0xff]  }
  0x99   : > { %492 = vmatprep.subr.bf16.mxu0 %v847_v10  ;;  %v858_v17 = vld [vmem:[%s1352_s18 + $0x40] ss:$8 sps:$4 sm:$0xff]   ;;  %v859_v18 = vld [vmem:[%s1352_s18 + $0x54] ss:$8 sps:$4 sm:$0xff]   ;;  %v861_v19 = vld [vmem:[%s1352_s18 + $0x50] ss:$8 sps:$4 sm:$0xff]  }
  0x9a   : > { %v862_v20 = vld [vmem:[%s1352_s18 + $0x64] ss:$8 sps:$4 sm:$0xff]   ;;  %v289_v21 = vld [vmem:[#allocation2 + $0x8] sm:$0xff]  ;;  %v864_v24 = vld [vmem:[%s1352_s18 + $0x60] ss:$8 sps:$4 sm:$0xff]   ;;  %s741_s27 = sshll.u32 %s1079_s21, 1 }
  0x9b   : > { %v291_v22 = vld [vmem:[#allocation2 + $0x18] sm:$0xff]  ;;  %v865_v25 = vld [vmem:[%s1352_s18 + $0x74] ss:$8 sps:$4 sm:$0xff]   ;;  %v867_v26 = vld [vmem:[%s1352_s18 + $0x70] ss:$8 sps:$4 sm:$0xff]   ;;  %s534_s13 = sld [smem:[#allocation6 + %s741_s27]] }
  0x9c   : > { %493 = vmatpush1.bf16.msra.mxu0 %v849_v11  ;;  %v293_v23 = vpack.c.bf16 %v291_v22, %v289_v21  ;;  %v868_v27 = vld [vmem:[%s1352_s18 + $0x84] ss:$8 sps:$4 sm:$0xff]   ;;  %v870_v28 = vld [vmem:[%s1352_s18 + $0x80] ss:$8 sps:$4 sm:$0xff]   ;;  %v871_v29 = vld [vmem:[%s1352_s18 + $0x94] ss:$8 sps:$4 sm:$0xff]  }
  0x9d   : > { %494 = vmatprep.subr.bf16.mxu0 %v850_v12  ;;  %v873_v30 = vld [vmem:[%s1352_s18 + $0x90] ss:$8 sps:$4 sm:$0xff]   ;;  %v874_v31 = vld [vmem:[%s1352_s18 + $0xa4] ss:$8 sps:$4 sm:$0xff]   ;;  %v876_v32 = vld [vmem:[%s1352_s18 + $0xa0] ss:$8 sps:$4 sm:$0xff]  }
  0x9e   : > { %522 = vmatprep.mubr.bf16.mxu0 %v293_v23  ;;  %v877_v33 = vld [vmem:[%s1352_s18 + $0xb4] ss:$8 sps:$4 sm:$0xff]   ;;  %v879_v34 = vld [vmem:[%s1352_s18 + $0xb0] ss:$8 sps:$4 sm:$0xff]   ;;  %v880_v35 = vld [vmem:[%s1352_s18 + $0xc4] ss:$8 sps:$4 sm:$0xff]  }
  0x9f   : > { %v882_v36 = vld [vmem:[%s1352_s18 + $0xc0] ss:$8 sps:$4 sm:$0xff]   ;;  %v883_v37 = vld [vmem:[%s1352_s18 + $0xd4] ss:$8 sps:$4 sm:$0xff]   ;;  %v885_v38 = vld [vmem:[%s1352_s18 + $0xd0] ss:$8 sps:$4 sm:$0xff]  }
  0xa0   : > { %495 = vmatpush1.bf16.msra.mxu0 %v852_v13  ;;  %v886_v39 = vld [vmem:[%s1352_s18 + $0xe4] ss:$8 sps:$4 sm:$0xff]   ;;  %v888_v40 = vld [vmem:[%s1352_s18 + $0xe0] ss:$8 sps:$4 sm:$0xff]   ;;  %v889_v41 = vld [vmem:[%s1352_s18 + $0xf4] ss:$8 sps:$4 sm:$0xff]  }
  0xa1   : > { %496 = vmatprep.subr.bf16.mxu0 %v853_v14  ;;  %v891_v42 = vld [vmem:[%s1352_s18 + $0xf0] ss:$8 sps:$4 sm:$0xff]   ;;  %v290_v44 = vld [vmem:[#allocation2 + $0x10] sm:$0xff]  ;;  %s535_s15 = sld [smem:[#allocation7 + %s741_s27]]  ;;  %p742_p8 = scmp.ne.s32.totalorder %s534_s13, 1 }
  0xa2   : > { %v288_v43 = vld [vmem:[#allocation2] sm:$0xff] }
  0xa3   : > { %v292_v45 = vpack.c.bf16 %v290_v44, %v288_v43 }
  0xa4   : > { %497 = vmatpush1.bf16.msra.mxu0 %v855_v15 }
  0xa5   : > { %498 = vmatprep.subr.bf16.mxu0 %v856_v16 }
  0xa8   : > { %499 = vmatpush1.bf16.msra.mxu0 %v858_v17 }
  0xa9   : > { %500 = vmatprep.subr.bf16.mxu0 %v859_v18 }
  0xac   : > { %501 = vmatpush1.bf16.msra.mxu0 %v861_v19 }
  0xad   : > { %502 = vmatprep.subr.bf16.mxu0 %v862_v20 }
  0xb0   : > { %503 = vmatpush1.bf16.msra.mxu0 %v864_v24 }
  0xb1   : > { %504 = vmatprep.subr.bf16.mxu0 %v865_v25 }
  0xb4   : > { %505 = vmatpush1.bf16.msra.mxu0 %v867_v26 }
  0xb5   : > { %506 = vmatprep.subr.bf16.mxu0 %v868_v27 }
  0xb8   : > { %507 = vmatpush1.bf16.msra.mxu0 %v870_v28 }
  0xb9   : > { %508 = vmatprep.subr.bf16.mxu0 %v871_v29 }
  0xbc   : > { %509 = vmatpush1.bf16.msra.mxu0 %v873_v30 }
  0xbd   : > { %510 = vmatprep.subr.bf16.mxu0 %v874_v31 }
  0xc0   : > { %511 = vmatpush1.bf16.msra.mxu0 %v876_v32 }
  0xc1   : > { %512 = vmatprep.subr.bf16.mxu0 %v877_v33 }
  0xc4   : > { %513 = vmatpush1.bf16.msra.mxu0 %v879_v34 }
  0xc5   : > { %514 = vmatprep.subr.bf16.mxu0 %v880_v35 }
  0xc8   : > { %515 = vmatpush1.bf16.msra.mxu0 %v882_v36 }
  0xc9   : > { %516 = vmatprep.subr.bf16.mxu0 %v883_v37 }
  0xcc   : > { %517 = vmatpush1.bf16.msra.mxu0 %v885_v38 }
  0xcd   : > { %518 = vmatprep.subr.bf16.mxu0 %v886_v39 }
  0xd0   : > { %519 = vmatpush1.bf16.msra.mxu0 %v888_v40 }
  0xd1   : > { %520 = vmatprep.subr.bf16.mxu0 %v889_v41 }
  0xd4   : > { %521 = vmatpush1.bf16.msra.mxu0 %v891_v42 }
  0xd7   : > { %523 = vmatmul.mubr.bf16.vlgmr.msra.gmra.mrb[0].mxu0 %v292_v45 }
 0x1a7   : > { %539 = sbr.rel (%p742_p8) target bundleno = 430 (0x1ae), region = 60 }
 0x1aa   : > { %v524_v46 = vpop.f32.mrb[0].mxu0 }
 0x1ab   : > { %v526_v47 = vpop.f32.mrb[1].mxu0  ;;  %544 = vst [vmem:[#allocation2] sm:$0xff] (!%p742_p8), %v524_v46 }
 0x1ac   : > { %v528_v48 = vpop.f32.mrb[2].mxu0  ;;  %545 = vst [vmem:[#allocation2 + $0x8] sm:$0xff] (!%p742_p8), %v526_v47 }
 0x1ad   : > { %v530_v49 = vpop.f32.mrb[3].mxu0 }
 0x1ae PF: > { %p743_p12 = scmp.ne.s32.totalorder %s535_s15, 1 }
 0x1af   : > { %s556_s30 = sld [smem:[#allocation8]] (!%p743_p12)  ;;  %v554_v50 = vld [vmem:[#allocation15] sm:$0xff] (!%p743_p12)  ;;  %v555_v52 = vld [vmem:[#allocation15 + $0x8] sm:$0xff] (!%p743_p12) }
 0x1b0   : > { %549 = sbr.rel (%p743_p12) target bundleno = 443 (0x1bb), region = 64 }
 0x1b5   : > { %v557_v51 = vstv (!%p743_p12), %s556_s30 }
 0x1b6   : > { %v558_v53 = vmul.f32 (!%p743_p12), %v557_v51, %v524_v46  ;;  %v559_v54 = vmul.f32 (!%p743_p12), %v557_v51, %v526_v47 }
 0x1b8   : > { %v560_v55 = vadd.f32 %v558_v53, %v554_v50  ;;  %v561_v56 = vadd.f32 %v559_v54, %v555_v52 }
 0x1ba   : > { %562 = vst [vmem:[#allocation15] sm:$0xff] %v560_v55  ;;  %563 = vst [vmem:[#allocation15 + $0x8] sm:$0xff] %v561_v56 }
 0x1bb PF: > { %s564_s21 = sadd.s32 1, %s741_s27 }
 0x1bc   : > { %s565_s10 = sld [smem:[#allocation6 + %s564_s21]] }
 0x1bd   : > { %s566_s8 = sld [smem:[#allocation7 + %s564_s21]] }
 0x1c2   : > { %p744_p2 = scmp.ne.s32.totalorder %s565_s10, 1 }
 0x1c3   : > { %575 = vst [vmem:[#allocation2 + $0x10] sm:$0xff] (!%p744_p2), %v528_v48  ;;  %576 = vst [vmem:[#allocation2 + $0x18] sm:$0xff] (!%p744_p2), %v530_v49 }
 0x1c4   : > { %570 = sbr.rel (%p744_p2) target bundleno = 459 (0x1cb), region = 68 }
 0x1cb PF: > { %p745_p7 = scmp.ne.s32.totalorder %s566_s8, 1 }
 0x1cc   : > { %s746_s14 = sld [smem:[#allocation8 + $0x1]] (!%p745_p7)  ;;  %v585_v57 = vld [vmem:[#allocation15] sm:$0xff] (!%p745_p7)  ;;  %v586_v59 = vld [vmem:[#allocation15 + $0x8] sm:$0xff] (!%p745_p7) }
 0x1cd   : > { %580 = sbr.rel (%p745_p7) target bundleno = 472 (0x1d8), region = 72 }
 0x1d2   : > { %v588_v58 = vstv (!%p745_p7), %s746_s14 }
 0x1d3   : > { %v589_v60 = vmul.f32 (!%p745_p7), %v588_v58, %v528_v48  ;;  %v590_v61 = vmul.f32 (!%p745_p7), %v588_v58, %v530_v49 }
 0x1d5   : > { %v591_v62 = vadd.f32 %v589_v60, %v585_v57  ;;  %v592_v63 = vadd.f32 %v590_v61, %v586_v59 }
 0x1d7   : > { %593 = vst [vmem:[#allocation15] sm:$0xff] %v591_v62  ;;  %594 = vst [vmem:[#allocation15 + $0x8] sm:$0xff] %v592_v63 }
 0x1d8 PF: > { %s1470_s17 = sadd.s32 4294967295, %s1087_s23   ;;  %s1097_s1 = smov [#allocation15]  }
 0x1d9   : > { %p1400_p9 = scmp.eq.s32.totalorder %s1470_s17, 2  ;;  %s602_s26 = sshll.u32 %s1097_s1, 4  ;;  %s603_s26 = int_to_ptr.vmem [resolvable:$true] %s602_s26 }
 0x1da   : > { %s997_s29 = scalar_lea.vmem %s603_s26, 256  ;;  %p1004_p1 = scmp.lt.s32.totalorder %s603_s26, %s603_s26 }
 0x1db   : > { %p998_p10 = scmp.ne.s32.totalorder %s603_s26, %s997_s29  ;;  %p1005_p4 = scmp.lt.s32.totalorder %s997_s29, %s997_s29 }
 0x1dd   : > { %p999_p3 = pnand %p998_p10, %p1400_p9  ;;  %p1006_p11 = por %p1005_p4, %p1004_p1 }
 0x1df   : > { %p1000_p13 = pneg %p999_p3 }
 0x1e1   : > { %p1007_p0 = pnand %p1006_p11, %p1000_p13 }
 0x1e3   : > { %1010 = shalt.err (!%p1007_p0)
}
 0x1e4   : > { %s1011_s18 = scalar_lea.hbm %s1449_s7, 256 }
 0x1e5   : > { %p1012_p5 = scmp.ne.s32.totalorder %s1449_s7, %s1011_s18  ;;  %p1017_p12 = scmp.lt.u32.totalorder %s1011_s18, %s1449_s7 }
 0x1e7   : > { %p1013_p6 = pnand %p1012_p5, %p1400_p9 }
 0x1e9   : > { %p1014_p8 = pneg %p1013_p6 }
 0x1eb   : > { %p1019_p2 = pnand %p1017_p12, %p1014_p8 }
 0x1ed   : > { %1022 = shalt.err (!%p1019_p2)
}
 0x1ee   : > { %765 = dma.vmem_to_hbm [thread:$0]  (%p1400_p9), %s603_s26, 256, %s1449_s7, [#allocation10]  }
 0x1ef   : > { %1062 = dma.done.wait (%p1400_p9), [#allocation10], 256  }
 0x1f0   : > { %1064 = vsyncadd (%p1400_p9), [#allocation10], 4294967040 }
 0x1f1 PF: > { %s35_s23 = sadd.s32 1, %s1087_s23   ;;  %s1472_s2 = smov %s1071_s19 }
 0x1f2   : > { %p32_p7 = scmp.ge.s32.totalorder %s35_s23, 5   ;;  %s1473_s19 = smov %s1075_s20 }
 0x1f3   : > { %s1474_s20 = smov %s1304_s16  ;;  %s1475_s21 = smov %s1083_s22 }
 0x1f4   : > { %s1476_s22 = smov %s1478_s9  ;;  %34 = sbr.rel (!%p32_p7) target bundleno = 40 (0x28), region = 111 }
 0x1fb   :  { %615 = vsyncpa [#allocation9], 1 }
 0x1fc   :  { %617 = vsyncpa [#allocation9 + $0x1], 1 }
 0x1fd   :  { %618 = vsyncpa [#allocation14], 1 }
 0x1fe   :  { %620 = vsyncpa [#allocation14 + $0x1], 1 }
 0x1ff   :  { %621 = vsyncpa [#allocation10], 1 }
 0x200   :  { %623 = vsyncpa [#allocation10 + $0x1], 1 }
 0x201   :  { %624 = vsyncpa [#allocation11], 1 }
 0x202   :  { %626 = vsyncpa [#allocation11 + $0x1], 1 }

</bundles_post_ra>
